<compile_context>
chip_gen: v6e
topology: v6e:2x2x1
jax: 0.10.0
libtpu: 0.0.40
codegen_flags: <defaults>
</compile_context>

<pallas_src>
import functools

import jax
import jax.numpy as jnp
from jax.experimental import pallas as pl
from jax.experimental.pallas import tpu as pltpu

_LANES = 128      # vreg lane width
_SUBLANES = 8     # f32 sublane tile


def _round_up(x: int, m: int) -> int:
    return ((x + m - 1) // m) * m


def _graph_agg_kernel(x_ref, w_ref, b_ref, o_ref, *,
                      graphs: int, nodes: int, nodes_valid: int,
                      packed: bool, roll_shift: int,
                      apply_tanh_activation: bool):
    """One grid step: `graphs` graphs (graphs*nodes node rows) resident in VMEM.

    x_ref: (graphs*nodes, D)   node features for this step
    w_ref: (D, slab)           fused [W_sigmoid | W_tanh | 0-pad] weight slab
    b_ref: (1, slab)           fused bias slab
    o_ref: (graphs, out_slab)  lane-dense output tile
    """
    x = x_ref[...]                                            # (rows, D)

    # One MXU matmul for both linear branches, f32 accumulation.
    z = jnp.dot(x, w_ref[...], preferred_element_type=jnp.float32)
    z = z + b_ref[...]                                        # (rows, slab)

    if packed:
        # Tanh block sits at lanes [out, 2*out); rotate it down to lane 0 so the
        # two branches are lane-aligned for the elementwise product.  roll is an
        # XLU lane rotation (jnp.roll semantics) and is effectively free here.
        z_t = pltpu.roll(z, roll_shift, axis=z.ndim - 1)
        # sigmoid(x) == 0.5*(tanh(x/2)+1): one EUP transcendental per element.
        gate = 0.5 * (jnp.tanh(0.5 * z) + 1.0)
        prod = gate * jnp.tanh(z_t)                           # cols >= out are garbage (finite), sliced off outside
    else:
        half = z.shape[-1] // 2                               # multiple of 128 -> lane-aligned static slices
        gate = 0.5 * (jnp.tanh(0.5 * z[:, :half]) + 1.0)
        prod = gate * jnp.tanh(z[:, half:])

    out_w = prod.shape[-1]
    # nodes % 8 == 0 (wrapper-side padding) -> relayout-free reshape.
    prod = prod.reshape(graphs, nodes, out_w)

    if nodes_valid != nodes:
        # Zero-padded node rows still pick up the bias (sigmoid(b)*tanh(b) != 0),
        # so mask them out of the node reduction.
        n_idx = jax.lax.broadcasted_iota(jnp.int32, prod.shape, 1)
        prod = jnp.where(n_idx < nodes_valid, prod, 0.0)

    out = jnp.sum(prod, axis=1)                               # (graphs, out_w)

    if apply_tanh_activation:
        out = jnp.tanh(out)

    # Dropout (eval mode) == identity.  Single lane-dense store.
    o_ref[...] = out.astype(o_ref.dtype)


def prepare_graph_aggregation_params(w_sig, b_sig, w_tanh, b_tanh):
    """One-time parameter packing (hoisted out of the per-forward path).

    w_*: (D, out)   weights already transposed to (in, out)
    b_*: (1, out)
    """
    D, out_features = w_sig.shape
    b_sig = jnp.reshape(b_sig, (1, out_features))
    b_tanh = jnp.reshape(b_tanh, (1, out_features))

    if 2 * out_features <= _LANES:
        # Pack both branches into a single 128-lane slab:
        #   cols [0, out)      -> sigmoid branch
        #   cols [out, 2*out)  -> tanh branch
        #   cols [2*out, 128)  -> zero padding
        slab = _LANES
        packed = True
        roll_shift = slab - out_features     # == roll(z, -out) with jnp.roll semantics
        w = jnp.zeros((D, slab), w_sig.dtype)
        w = w.at[:, :out_features].set(w_sig)
        w = w.at[:, out_features:2 * out_features].set(w_tanh)
        b = jnp.zeros((1, slab), b_sig.dtype)
        b = b.at[:, :out_features].set(b_sig)
        b = b.at[:, out_features:2 * out_features].set(b_tanh)
        out_slab = slab
    else:
        # Fallback for wide heads: each branch gets its own lane-aligned half.
        half = _round_up(out_features, _LANES)
        slab = 2 * half
        packed = False
        roll_shift = 0
        w = jnp.zeros((D, slab), w_sig.dtype)
        w = w.at[:, :out_features].set(w_sig)
        w = w.at[:, half:half + out_features].set(w_tanh)
        b = jnp.zeros((1, slab), b_sig.dtype)
        b = b.at[:, :out_features].set(b_sig)
        b = b.at[:, half:half + out_features].set(b_tanh)
        out_slab = half

    return {
        "w": w, "b": b,
        "out_features": out_features,
        "slab": slab,
        "out_slab": out_slab,
        "packed": packed,
        "roll_shift": roll_shift,
    }


def _pick_graphs_per_step(batch: int, nodes_pad: int, target_rows: int = 1024) -> int:
    """Graphs per grid step.

    Whole batch in one step when tiny; otherwise ~<=1024 node rows per step so
    z/i/j live ranges stay small, the pipeline double-buffers, and the per-step
    output tile keeps >= 8 sublane rows (unmasked stores).  Sized comfortably
    under v7x's 64 MiB VMEM and the 16 MiB v5e scoped-VMEM default.
    """
    tb = min(batch, max(1, target_rows // max(nodes_pad, 1)))
    if tb >= batch:
        return batch
    tb = (tb // _SUBLANES) * _SUBLANES
    while tb >= _SUBLANES and batch % tb:
        tb -= _SUBLANES
    return tb if tb >= _SUBLANES else batch


def graph_aggregation(x, params, *, activation_tanh=False):
    """x: (B, N, D); params from prepare_graph_aggregation_params -> (B, out)."""
    B, N, D = x.shape
    out_features = params["out_features"]
    slab = params["slab"]
    out_slab = params["out_slab"]

    # Pad the node axis to a multiple of 8 (f32 sublane tile) so the in-kernel
    # (rows, slab) -> (graphs, nodes, slab) reshape is a free relayout.
    nodes_pad = _round_up(N, _SUBLANES)
    if nodes_pad != N:
        x = jnp.pad(x, ((0, 0), (0, nodes_pad - N), (0, 0)))
    x2 = x.reshape(B * nodes_pad, D)

    tb = _pick_graphs_per_step(B, nodes_pad)
    grid = (B // tb,)

    kernel = functools.partial(
        _graph_agg_kernel,
        graphs=tb, nodes=nodes_pad, nodes_valid=N,
        packed=params["packed"], roll_shift=params["roll_shift"],
        apply_tanh_activation=activation_tanh)

    rows = B * nodes_pad
    f32 = 4
    cost = pl.CostEstimate(
        flops=2 * rows * D * slab + 3 * rows * out_slab,
        transcendentals=2 * rows * out_slab + (B * out_slab if activation_tanh else 0),
        bytes_accessed=(rows * D + D * slab + slab + B * out_slab) * f32,
    )

    out_padded = pl.pallas_call(
        kernel,
        out_shape=jax.ShapeDtypeStruct((B, out_slab), x.dtype),
        grid=grid,
        in_specs=[
            pl.BlockSpec((tb * nodes_pad, D), lambda i: (i, 0)),   # node features
            pl.BlockSpec((D, slab), lambda i: (0, 0)),             # fused weights (broadcast)
            pl.BlockSpec((1, slab), lambda i: (0, 0)),             # fused bias    (broadcast)
        ],
        out_specs=pl.BlockSpec((tb, out_slab), lambda i: (i, 0)),
        compiler_params=pltpu.CompilerParams(
            # Graph axis is independent -> shardable across v7x's two TCs.
            dimension_semantics=("parallel",)),
        cost_estimate=cost,
    )(x2, params["w"], params["b"])

    # Drop the padded / garbage columns.
    return out_padded[:, :out_features]


def _reference(x, w_sig, b_sig, w_tanh, b_tanh, activation_tanh=False):
    i = jax.nn.sigmoid(jnp.einsum("bnd,do->bno", x, w_sig) + b_sig)
    j = jnp.tanh(jnp.einsum("bnd,do->bno", x, w_tanh) + b_tanh)
    out = jnp.sum(i * j, axis=1)
    if activation_tanh:
        out = jnp.tanh(out)
    return out


if __name__ == "__main__":
    # Small shapes consistent with the module:
    #   in_features=28, b_dim=4 -> D = 32 ; out_features=16 ; B=2 ; N=8
    B, N = 2, 8
    in_features, b_dim, out_features = 28, 4, 16
    D = in_features + b_dim

    key = jax.random.PRNGKey(0)
    kx, kws, kbs, kwt, kbt = jax.random.split(key, 5)

    x = jax.random.normal(kx, (B, N, D), dtype=jnp.float32)

    # Deterministic parameter init (PyTorch nn.Linear uses U(-1/sqrt(fan_in), .));
    # weights stored already transposed to (D, out) for the kernel.
    bound = 1.0 / jnp.sqrt(jnp.float32(D))
    w_sig = jax.random.uniform(kws, (D, out_features), jnp.float32, -bound, bound)
    b_sig = jax.random.uniform(kbs, (1, out_features), jnp.float32, -bound, bound)
    w_tanh = jax.random.uniform(kwt, (D, out_features), jnp.float32, -bound, bound)
    b_tanh = jax.random.uniform(kbt, (1, out_features), jnp.float32, -bound, bound)

    # One-time parameter packing (hoisted out of the per-call path).
    params = prepare_graph_aggregation_params(w_sig, b_sig, w_tanh, b_tanh)

    # activation = tanh (typical MolGAN usage)
    y = jax.block_until_ready(graph_aggregation(x, params, activation_tanh=True))
    y_ref = _reference(x, w_sig, b_sig, w_tanh, b_tanh, activation_tanh=True)
    assert y.shape == (B, out_features)
    assert jnp.allclose(y, y_ref, atol=1e-5, rtol=1e-5)

    # activation = None path
    y2 = jax.block_until_ready(graph_aggregation(x, params, activation_tanh=False))
    y2_ref = _reference(x, w_sig, b_sig, w_tanh, b_tanh, activation_tanh=False)
    assert jnp.allclose(y2, y2_ref, atol=1e-5, rtol=1e-5)

    print("KERNEL_OK")
</pallas_src>

<mosaic_0001>
module attributes {stable_mosaic.version = 11 : i64} {
  func.func @_graph_agg_kernel(%arg0: i32, %arg1: memref<16x32xf32, #tpu.memory_space<vmem>>, %arg2: memref<32x128xf32, #tpu.memory_space<vmem>>, %arg3: memref<1x128xf32, #tpu.memory_space<vmem>>, %arg4: memref<2x128xf32, #tpu.memory_space<vmem>>) attributes {dimension_semantics = [#tpu.dimension_semantics<parallel>], iteration_bounds = array<i64: 1>, scalar_prefetch = 0 : i64, scratch_operands = 0 : i64, tpu.core_type = #tpu.core_type<tc>, window_params = [{transform_indices = @transform_0, window_bounds = array<i64: 16, 32>}, {pipeline_mode = #tpu.pipeline_mode<synchronous>, transform_indices = @transform_1, window_bounds = array<i64: 32, 128>}, {pipeline_mode = #tpu.pipeline_mode<synchronous>, transform_indices = @transform_2, window_bounds = array<i64: 1, 128>}, {transform_indices = @transform_3, window_bounds = array<i64: 2, 128>}]} {
    %c0 = arith.constant 0 : index
    %c0_0 = arith.constant 0 : index
    %0 = vector.load %arg1[%c0, %c0_0] : memref<16x32xf32, #tpu.memory_space<vmem>>, vector<16x32xf32>
    %c0_1 = arith.constant 0 : index
    %c0_2 = arith.constant 0 : index
    %1 = vector.load %arg2[%c0_1, %c0_2] : memref<32x128xf32, #tpu.memory_space<vmem>>, vector<32x128xf32>
    %cst = arith.constant dense<0.000000e+00> : vector<16x128xf32>
    %2 = tpu.matmul %0, %1, %cst {dimension_numbers = #tpu.dot_dimension_numbers<[1], [0], [0], [1], [0, 0, 1, 1], [], []>} : vector<16x32xf32>, vector<32x128xf32>, vector<16x128xf32> -> vector<16x128xf32>
    %c0_3 = arith.constant 0 : index
    %c0_4 = arith.constant 0 : index
    %3 = vector.load %arg3[%c0_3, %c0_4] : memref<1x128xf32, #tpu.memory_space<vmem>>, vector<1x128xf32>
    %4 = vector.broadcast %3 : vector<1x128xf32> to vector<16x128xf32>
    %5 = arith.addf %2, %4 : vector<16x128xf32>
    %c112_i32 = arith.constant 112 : i32
    %6 = tpu.dynamic_rotate %5 by %c112_i32 dim 1 : vector<16x128xf32>, i32 -> vector<16x128xf32>
    %cst_5 = arith.constant 5.000000e-01 : f32
    %7 = vector.broadcast %cst_5 : f32 to vector<16x128xf32>
    %8 = arith.mulf %7, %5 : vector<16x128xf32>
    %9 = math.tanh %8 : vector<16x128xf32>
    %cst_6 = arith.constant 1.000000e+00 : f32
    %10 = vector.broadcast %cst_6 : f32 to vector<16x128xf32>
    %11 = arith.addf %9, %10 : vector<16x128xf32>
    %cst_7 = arith.constant 5.000000e-01 : f32
    %12 = vector.broadcast %cst_7 : f32 to vector<16x128xf32>
    %13 = arith.mulf %12, %11 : vector<16x128xf32>
    %14 = math.tanh %6 : vector<16x128xf32>
    %15 = arith.mulf %13, %14 : vector<16x128xf32>
    %16 = vector.shape_cast %15 : vector<16x128xf32> to vector<2x8x128xf32>
    %cst_8 = arith.constant dense<0.000000e+00> : vector<2x128xf32>
    %17 = vector.multi_reduction <add>, %16, %cst_8 [1] : vector<2x8x128xf32> to vector<2x128xf32>
    %18 = math.tanh %17 : vector<2x128xf32>
    %c0_9 = arith.constant 0 : index
    %c0_10 = arith.constant 0 : index
    %19 = vector.load %arg4[%c0_9, %c0_10] : memref<2x128xf32, #tpu.memory_space<vmem>>, vector<2x128xf32>
    tpu.vector_store %arg4[%c0_9, %c0_10], %18 {strides = array<i32>} : memref<2x128xf32, #tpu.memory_space<vmem>>, vector<2x128xf32>,
    return
  }
  func.func @transform_0(%arg0: i32) -> (i32, i32) {
    %c0_i32 = arith.constant 0 : i32
    %c0_i32_0 = arith.constant 0 : i32
    return %arg0, %c0_i32 : i32, i32
  }
  func.func @transform_1(%arg0: i32) -> (i32, i32) {
    %c0_i32 = arith.constant 0 : i32
    %c0_i32_0 = arith.constant 0 : i32
    %c0_i32_1 = arith.constant 0 : i32
    return %c0_i32, %c0_i32_0 : i32, i32
  }
  func.func @transform_2(%arg0: i32) -> (i32, i32) {
    %c0_i32 = arith.constant 0 : i32
    %c0_i32_0 = arith.constant 0 : i32
    %c0_i32_1 = arith.constant 0 : i32
    return %c0_i32, %c0_i32_0 : i32, i32
  }
  func.func @transform_3(%arg0: i32) -> (i32, i32) {
    %c0_i32 = arith.constant 0 : i32
    %c0_i32_0 = arith.constant 0 : i32
    return %arg0, %c0_i32 : i32, i32
  }
}

</mosaic_0001>

<bundles_post_ra>
// kernel: tpu_custom_call.1
= control target key start
LH: loop header
LB: loop body
LE: loop exit
PB: predicated region body
PF: predicated region fallthrough
CT: control target
= control target key end

     0   :  { %8 = vsyncpa [#allocation3], 0  ;;  %s334_s0 = inlined_call_operand.hbm [shape: f32[16,32], index: 0, kind: input, shape index: {}]   ;;  %s335_s1 = inlined_call_operand.hbm [shape: f32[32,128], index: 1, kind: input, shape index: {}]   ;;  %s336_s2 = inlined_call_operand.vmem [shape: f32[1,128], index: 2, kind: input, shape index: {}]   ;;  %s337_s3 = inlined_call_operand.hbm [shape: f32[2,128], index: 3, kind: output, shape index: {}]  }
   0x1   :  { %9 = vsyncpa [#allocation6], 0 }
   0x2   :  { %10 = vsyncpa [#allocation4], 0  ;;  %s294_s12 = smov [#allocation2]  }
   0x3   :  { %s16_s13 = sshll.u32 %s294_s12, 4  ;;  %s17_s13 = int_to_ptr.vmem [resolvable:$true] %s16_s13 }
   0x4   :  { %s236_s14 = scalar_lea.vmem %s17_s13, 256  ;;  %p241_p1 = scmp.lt.s32.totalorder %s17_s13, %s17_s13 }
   0x5   :  { %p237_p0 = scmp.ne.s32.totalorder %s17_s13, %s236_s14  ;;  %p242_p2 = scmp.lt.s32.totalorder %s236_s14, %s236_s14 }
   0x7   :  { %p243_p3 = por %p242_p2, %p241_p1 }
   0x9   :  { %p244_p4 = pnand %p243_p3, %p237_p0 }
   0xb   :  { %247 = shalt.err (!%p244_p4)
}
   0xc   :  { %s295_s15 = smov 128   ;;  %s296_s16 = smov 8  }
   0xd   :  { %22 = dma.hbm_to_vmem [thread:$0]  %s334_s0, 256, %s17_s13, [#allocation3], %s295_s15, %s295_s15, %s296_s16  }
   0xe   :  { %s297_s19 = smov [#allocation5]  }
   0xf   :  { %s28_s20 = sshll.u32 %s297_s19, 4  ;;  %s29_s20 = int_to_ptr.vmem [resolvable:$true] %s28_s20 }
  0x10   :  { %s256_s21 = scalar_lea.vmem %s29_s20, 512  ;;  %p261_p6 = scmp.lt.s32.totalorder %s29_s20, %s29_s20 }
  0x11   :  { %p257_p5 = scmp.ne.s32.totalorder %s29_s20, %s256_s21  ;;  %p262_p7 = scmp.lt.s32.totalorder %s256_s21, %s256_s21 }
  0x13   :  { %p263_p8 = por %p262_p7, %p261_p6 }
  0x15   :  { %p264_p9 = pnand %p263_p8, %p257_p5 }
  0x17   :  { %267 = shalt.err (!%p264_p9)
}
  0x18   :  { %34 = dma.hbm_to_vmem [thread:$0]  %s335_s1, 512, %s29_s20, [#allocation6], %s295_s15, %s295_s15, %s296_s16  }
  0x19   :  { %288 = dma.done.wait [#allocation3], 256  }
  0x1a   :  { %289 = vsyncadd [#allocation3], 4294967040 }
  0x1b   :  { %290 = dma.done.wait [#allocation6], 512  }
  0x1c   :  { %291 = vsyncadd [#allocation6], 4294966784  ;;  %vm56_vm0 = vcmask 261120   ;;  %v48_v0 = vld [vmem:[#allocation5 + $0x18] sm:$0xff]  ;;  %v47_v1 = vld [vmem:[#allocation5 + $0x10] sm:$0xff]  ;;  %s298_s24 = smov 112  }
  0x1d   :  { %199 = vmatprep.subr.mxu0 %v48_v0  ;;  %v43_v2 = vld [vmem:[#allocation2] sm:$0xff]  ;;  %v46_v3 = vld [vmem:[#allocation5 + $0x8] sm:$0xff]  ;;  %v45_v4 = vld [vmem:[#allocation5] sm:$0xff]  ;;  %vm170_vm1 = vcmask 1041409  }
  0x1e   :  { %200 = vmatpush3.msra.mxu0 %v48_v0  ;;  %207 = vmatprep.mubr.msk.f32.mxu0 %vm56_vm0, %v43_v2  ;;  %v44_v5 = vld [vmem:[#allocation2 + $0x8] sm:$0xff]  ;;  %v190_v7 = vld [vmem:[%s336_s2] ss:$0 sm:$0xff]  ;;  %s299_s2 = smov [#allocation7]  }
  0x1f   :  { %201 = vmatprep.subr.mxu0 %v47_v1  ;;  %s180_s25 = sshll.u32 %s299_s2, 4  ;;  %s181_s25 = int_to_ptr.vmem [resolvable:$true] %s180_s25 }
  0x20   :  { %202 = vmatpush3.msra.mxu0 %v47_v1  ;;  %s268_s26 = scalar_lea.vmem %s181_s25, 32  ;;  %p273_p11 = scmp.lt.s32.totalorder %s181_s25, %s181_s25 }
  0x21   :  { %203 = vmatprep.subr.mxu0 %v46_v3  ;;  %p269_p10 = scmp.ne.s32.totalorder %s181_s25, %s268_s26  ;;  %p274_p12 = scmp.lt.s32.totalorder %s268_s26, %s268_s26 }
  0x22   :  { %204 = vmatpush3.msra.mxu0 %v46_v3 }
  0x23   :  { %205 = vmatprep.subr.mxu0 %v45_v4  ;;  %p275_p13 = por %p274_p12, %p273_p11 }
  0x24   :  { %206 = vmatpush3.msra.mxu0 %v45_v4 }
  0x25   :  { %208 = vmatmul.mubr.msk.f32.vlgmr.msra.gmra.mxu0 %vm56_vm0, %v44_v5  ;;  %p276_p0 = pnand %p275_p13, %p269_p10 }
  0xe5   :  { %v209_v6 = vpop.f32.mrf.mxu0 }
  0xe6   :  { %v135_v10 = vadd.f32 %v209_v6, %v190_v7 }
  0xe7   :  { %v129_v8 = vpop.f32.mrf.mxu0 }
  0xe8   :  { %v130_v9 = vadd.f32 %v190_v7, %v129_v8  ;;  %v143_v12 = vmul.f32 0.5, %v135_v10 }
  0xea   :  { %138 = vrot.lane.b32.xlu0 %v130_v9, %s298_s24  ;;  %v142_v11 = vmul.f32 0.5, %v130_v9 }
  0xec   :  { %216 = vtanh.f32 %v142_v11 }
  0xed   :  { %218 = vtanh.f32 %v143_v12 }
  0xee   :  { %140 = vrot.lane.b32.xlu0 %v135_v10, %s298_s24 }
  0xf9   :  { %v217_v15 = vpop.eup %216 }
  0xfa   :  { %v146_v16 = vadd.f32 1.0, %v217_v15  ;;  %v219_v17 = vpop.eup %218 }
  0xfb   :  { %v147_v18 = vadd.f32 1.0, %v219_v17 }
  0xfc   :  { %v148_v19 = vmul.f32 0.5, %v146_v16 }
  0xfd   :  { %v149_v22 = vmul.f32 0.5, %v147_v18 }
 0x15c   :  { %v139_v13 = vpop.permute.xlu0 %138 }
 0x15d   :  { %220 = vtanh.f32 %v139_v13 }
 0x160   :  { %v141_v14 = vpop.permute.xlu0 %140 }
 0x161   :  { %222 = vtanh.f32 %v141_v14 }
 0x16a   :  { %v221_v20 = vpop.eup %220 }
 0x16b   :  { %v152_v21 = vmul.f32 %v221_v20, %v148_v19 }
 0x16d   :  { %v154_v23 = vrot.slane %v152_v21, 4 }
 0x16e   :  { %v223_v24 = vpop.eup %222 }
 0x16f   :  { %v155_v25 = vadd.f32 %v154_v23, %v152_v21  ;;  %v153_v26 = vmul.f32 %v223_v24, %v149_v22 }
 0x171   :  { %v156_v27 = vrot.slane %v155_v25, 2  ;;  %v160_v28 = vrot.slane %v153_v26, 4 }
 0x173   :  { %v157_v29 = vadd.f32 %v156_v27, %v155_v25  ;;  %v161_v30 = vadd.f32 %v160_v28, %v153_v26 }
 0x175   :  { %v158_v31 = vrot.slane %v157_v29, 1  ;;  %v162_v32 = vrot.slane %v161_v30, 2 }
 0x177   :  { %v163_v33 = vadd.f32 %v162_v32, %v161_v30  ;;  %v159_v34 = vadd.f32 %v158_v31, %v157_v29 }
 0x179   :  { %v164_v35 = vrot.slane %v163_v33, 1  ;;  %224 = vtanh.f32 %v159_v34 }
 0x17b   :  { %v165_v36 = vadd.f32 %v164_v35, %v163_v33 }
 0x17d   :  { %226 = vtanh.f32 %v165_v36 }
 0x186   :  { %v225_v37 = vpop.eup %224 }
 0x18a   :  { %v227_v38 = vpop.eup %226 }
 0x18b   :  { %v171_v39 = vsel %vm170_vm1, %v227_v38, %v225_v37 }
 0x18c   :  { %173 = vst [vmem:[#allocation7] sm:$0x3] %v171_v39 }
 0x18d   :  { %279 = shalt.err (!%p276_p0)
}
 0x18e   :  { %183 = dma.vmem_to_hbm [thread:$0]  %s181_s25, 32, %s337_s3, [#allocation4]  }
 0x18f   :  { %292 = dma.done.wait [#allocation4], 32  }
 0x190   :  { %293 = vsyncadd [#allocation4], 4294967264 }
 0x191   :  { %187 = vsyncpa [#allocation3], 1 }
 0x192   :  { %188 = vsyncpa [#allocation6], 1 }
 0x193   :  { %189 = vsyncpa [#allocation4], 1 }

</bundles_post_ra>
